<compile_context>
chip_gen: v5e
topology: v5e:2x2
jax: 0.10.0
libtpu: 0.0.40
codegen_flags: <defaults>
</compile_context>

<pallas_src>
import functools

import jax
import jax.numpy as jnp
from jax.experimental import pallas as pl
from jax.experimental.pallas import tpu as pltpu

LANE = 128


def _round_up(x, m):
    return ((x + m - 1) // m) * m


def _vae_kernel(x_ref,
                w1_ref, b1_ref,            # encoder[0]
                w2_ref, b2_ref,            # encoder[2] (combined mu|logvar head)
                wd1_ref, bd1_ref,          # decoder hidden 1 (rows padded to 128)
                wd2_ref, bd2_ref,          # decoder hidden 2
                wd3_ref, bd3_ref,          # decoder output (padded cols bias -1e30)
                out_ref, mulv_ref):
    x = x_ref[...]                                           # (TM, F_IN_P) bf16

    # ----- encoder: Linear -> ReLU -> Linear (single combined mu|logvar dot) -----
    h1 = jnp.dot(x, w1_ref[...], preferred_element_type=jnp.float32) + b1_ref[...]
    h1 = jnp.maximum(h1, 0.0).astype(jnp.bfloat16)

    # mu in lanes [0, d), logvar in [d, 2d), zeros elsewhere (zero-padded W/b).
    mulv = jnp.dot(h1, w2_ref[...], preferred_element_type=jnp.float32) + b2_ref[...]
    mulv_ref[...] = mulv

    # eval-mode reparameterisation: z = mu.  Feeding the full 128-lane buffer is
    # exact because wd1 rows [d, 128) are zero, so logvar/padded lanes add nothing.
    z = mulv.astype(jnp.bfloat16)

    # ----- dense decoder: Linear -> ReLU -> Linear -> ReLU -> Linear -> Softmax -----
    g = jnp.dot(z, wd1_ref[...], preferred_element_type=jnp.float32) + bd1_ref[...]
    g = jnp.maximum(g, 0.0).astype(jnp.bfloat16)
    g = jnp.dot(g, wd2_ref[...], preferred_element_type=jnp.float32) + bd2_ref[...]
    g = jnp.maximum(g, 0.0).astype(jnp.bfloat16)
    logits = jnp.dot(g, wd3_ref[...], preferred_element_type=jnp.float32) + bd3_ref[...]
    # padded logit columns carry a -1e30 bias -> exp() == 0, softmax exact over real cols

    m = jnp.max(logits, axis=1, keepdims=True)
    e = jnp.exp(logits - m)
    # exact divide (NOT approx reciprocal): rows must sum to 1 to float precision.
    out_ref[...] = e / jnp.sum(e, axis=1, keepdims=True)


def _pad_w(w, rows, cols):
    """Zero-pad a weight to (rows, cols) and cast to bf16."""
    return (jnp.zeros((rows, cols), jnp.bfloat16)
            .at[:w.shape[0], :w.shape[1]].set(w.astype(jnp.bfloat16)))


def _pad_b(b, cols, fill=0.0):
    """Pad a (1, n) bias to (1, cols) with `fill`, keep f32 for accurate adds."""
    return (jnp.full((1, cols), fill, jnp.float32)
            .at[:, :b.shape[1]].set(b.astype(jnp.float32)))


def pack_params(params, *, d, f_in, f_out):
    """One-time padding/casting of all weights & biases to lane-dense bf16/f32.

    Call once and reuse the returned pytree for every forward call.
    """
    dd = d * d
    f_in_p = _round_up(f_in, LANE)
    dd_p = _round_up(dd, LANE)
    two_d_p = _round_up(2 * d, LANE)     # combined mu|logvar lane width (>= 128)
    f_out_p = _round_up(f_out, LANE)

    packed = dict(
        w1=_pad_w(params["w1"], f_in_p, dd_p),
        b1=_pad_b(params["b1"], dd_p),
        # single encoder head: columns [0, 2d) real, rest zero
        w2=_pad_w(params["w2"], dd_p, two_d_p),
        b2=_pad_b(params["b2"], two_d_p),
        # decoder first layer: rows padded to two_d_p so combined mu|logvar can be fed
        wd1=_pad_w(params["wd1"], two_d_p, dd_p),
        bd1=_pad_b(params["bd1"], dd_p),
        wd2=_pad_w(params["wd2"], dd_p, dd_p),
        bd2=_pad_b(params["bd2"], dd_p),
        wd3=_pad_w(params["wd3"], dd_p, f_out_p),
        bd3=_pad_b(params["bd3"], f_out_p, fill=-1e30),   # kill padded softmax cols
    )
    return packed


def _pick_tm(B):
    """Batch tile: multiple of 16 (bf16 sublanes); large tiles for large B;
    ensure >= 2 grid steps once B_p >= 256 so v7x megacore can split the axis."""
    B16 = _round_up(B, 16)
    if B16 <= 128:
        return B16
    for cand in (512, 256):
        if B16 >= 2 * cand:
            return cand
    return 128


@functools.partial(jax.jit, static_argnames=("d", "f_out"))
def vae_forward(x_img, packed, *, d, f_out):
    """x_img: (B, H, W) float32. packed: output of pack_params.
    Returns (probs (B, F_out), mu (B, d), logvar (B, d))."""
    B = x_img.shape[0]
    x = x_img.reshape(B, -1)                                 # flatten like x.view(-1, F_in)
    f_in = x.shape[1]

    f_in_p = packed["w1"].shape[0]
    dd_p = packed["w1"].shape[1]
    two_d_p = packed["w2"].shape[1]
    f_out_p = packed["wd3"].shape[1]

    # ---- batch (sublane) tiling ----
    TM = _pick_tm(B)
    B_p = _round_up(B, TM)
    grid = (B_p // TM,)

    # ---- input: single fused cast + pad (no zeros+scatter extra HBM pass) ----
    x_bf = x.astype(jnp.bfloat16)
    pad_rows = B_p - B
    pad_cols = f_in_p - f_in
    x_p = jnp.pad(x_bf, ((0, pad_rows), (0, pad_cols))) if (pad_rows or pad_cols) else x_bf

    # ---- specs ----
    def batch_spec(cols):
        return pl.BlockSpec((TM, cols), lambda i: (i, 0))

    def resident(arr):
        return pl.BlockSpec(arr.shape, lambda i: (0, 0))     # VMEM-resident across grid

    params_list = [packed["w1"], packed["b1"], packed["w2"], packed["b2"],
                   packed["wd1"], packed["bd1"], packed["wd2"], packed["bd2"],
                   packed["wd3"], packed["bd3"]]

    in_specs = [batch_spec(f_in_p)] + [resident(p) for p in params_list]
    out_specs = (batch_spec(f_out_p), batch_spec(two_d_p))
    out_shapes = (
        jax.ShapeDtypeStruct((B_p, f_out_p), jnp.float32),
        jax.ShapeDtypeStruct((B_p, two_d_p), jnp.float32),
    )

    param_bytes = sum(int(p.size) * p.dtype.itemsize for p in params_list)
    flops = 2 * B_p * (f_in_p * dd_p + dd_p * two_d_p + two_d_p * dd_p
                       + dd_p * dd_p + dd_p * f_out_p)
    bytes_accessed = (int(x_p.size) * 2 + param_bytes
                      + B_p * (f_out_p + two_d_p) * 4)
    cost = pl.CostEstimate(flops=flops,
                           transcendentals=B_p * f_out_p,
                           bytes_accessed=bytes_accessed)

    probs_p, mulv_p = pl.pallas_call(
        _vae_kernel,
        out_shape=out_shapes,
        grid=grid,
        in_specs=in_specs,
        out_specs=out_specs,
        compiler_params=pltpu.CompilerParams(
            dimension_semantics=("parallel",),
            vmem_limit_bytes=32 * 1024 * 1024),
        cost_estimate=cost,
    )(x_p, *params_list)

    probs = probs_p[:B, :f_out]
    mu = mulv_p[:B, :d]
    logvar = mulv_p[:B, d:2 * d]
    return probs, mu, logvar


def init_params(key, *, f_in, d, f_out):
    """Deterministic synthetic params. PyTorch Linear stores W as (out, in);
    we initialize in (in, out) layout directly so the kernel does x @ W + b."""
    ks = jax.random.split(key, 10)
    dd = d * d

    def lin(kw, kb, fan_in, fan_out):
        bound = 1.0 / jnp.sqrt(fan_in)
        w = jax.random.uniform(kw, (fan_in, fan_out), jnp.float32, -bound, bound)
        b = jax.random.uniform(kb, (1, fan_out), jnp.float32, -bound, bound)
        return w, b

    w1, b1 = lin(ks[0], ks[1], f_in, dd)        # encoder[0]
    w2, b2 = lin(ks[2], ks[3], dd, 2 * d)       # encoder[2]
    wd1, bd1 = lin(ks[4], ks[5], d, dd)         # output_network[0]
    wd2, bd2 = lin(ks[6], ks[7], dd, dd)        # output_network[2]
    wd3, bd3 = lin(ks[8], ks[9], dd, f_out)     # output_network[4]
    return dict(w1=w1, b1=b1, w2=w2, b2=b2,
                wd1=wd1, bd1=bd1, wd2=wd2, bd2=bd2, wd3=wd3, bd3=bd3)


def _reference(x_img, p, *, d):
    B = x_img.shape[0]
    x = x_img.reshape(B, -1)
    h = jnp.maximum(x @ p["w1"] + p["b1"], 0.0)
    ml = h @ p["w2"] + p["b2"]
    mu, logvar = ml[:, :d], ml[:, d:]
    z = mu
    g = jnp.maximum(z @ p["wd1"] + p["bd1"], 0.0)
    g = jnp.maximum(g @ p["wd2"] + p["bd2"], 0.0)
    logits = g @ p["wd3"] + p["bd3"]
    return jax.nn.softmax(logits, axis=1), mu, logvar


if __name__ == "__main__":
    # small shapes consistent with the module: d=8, size_input=[16,16], size_output=10
    d = 8
    H = W = 16
    f_in = H * W
    f_out = 10
    B = 4

    key = jax.random.PRNGKey(0)
    k_x, k_p = jax.random.split(key)
    x_img = jax.random.normal(k_x, (B, H, W), jnp.float32)
    params = init_params(k_p, f_in=f_in, d=d, f_out=f_out)

    # one-time padding/casting of weights (reused across calls)
    packed = pack_params(params, d=d, f_in=f_in, f_out=f_out)

    probs, mu, logvar = vae_forward(x_img, packed, d=d, f_out=f_out)
    jax.block_until_ready((probs, mu, logvar))

    # sanity check against pure-JAX f32 reference (bf16 MXU path -> relaxed tol)
    r_probs, r_mu, r_logvar = _reference(x_img, params, d=d)
    assert probs.shape == (B, f_out) and mu.shape == (B, d) and logvar.shape == (B, d)
    assert jnp.allclose(probs, r_probs, atol=3e-2, rtol=3e-2)
    assert jnp.allclose(mu, r_mu, atol=3e-2, rtol=3e-2)
    assert jnp.allclose(logvar, r_logvar, atol=3e-2, rtol=3e-2)
    # softmax rows must sum to 1 (exact divide in the kernel)
    assert jnp.allclose(jnp.sum(probs, axis=1), jnp.ones((B,)), atol=1e-3)

    print("KERNEL_OK")
</pallas_src>

<mosaic_0001>
module attributes {stable_mosaic.version = 11 : i64} {
  func.func @_vae_kernel(%arg0: i32, %arg1: memref<16x256xbf16, #tpu.memory_space<vmem>>, %arg2: memref<256x128xbf16, #tpu.memory_space<vmem>>, %arg3: memref<1x128xf32, #tpu.memory_space<vmem>>, %arg4: memref<128x128xbf16, #tpu.memory_space<vmem>>, %arg5: memref<1x128xf32, #tpu.memory_space<vmem>>, %arg6: memref<128x128xbf16, #tpu.memory_space<vmem>>, %arg7: memref<1x128xf32, #tpu.memory_space<vmem>>, %arg8: memref<128x128xbf16, #tpu.memory_space<vmem>>, %arg9: memref<1x128xf32, #tpu.memory_space<vmem>>, %arg10: memref<128x128xbf16, #tpu.memory_space<vmem>>, %arg11: memref<1x128xf32, #tpu.memory_space<vmem>>, %arg12: memref<16x128xf32, #tpu.memory_space<vmem>>, %arg13: memref<16x128xf32, #tpu.memory_space<vmem>>) attributes {dimension_semantics = [#tpu.dimension_semantics<parallel>], iteration_bounds = array<i64: 1>, scalar_prefetch = 0 : i64, scratch_operands = 0 : i64, tpu.core_type = #tpu.core_type<tc>, window_params = [{transform_indices = @transform_0, window_bounds = array<i64: 16, 256>}, {pipeline_mode = #tpu.pipeline_mode<synchronous>, transform_indices = @transform_1, window_bounds = array<i64: 256, 128>}, {pipeline_mode = #tpu.pipeline_mode<synchronous>, transform_indices = @transform_2, window_bounds = array<i64: 1, 128>}, {pipeline_mode = #tpu.pipeline_mode<synchronous>, transform_indices = @transform_3, window_bounds = array<i64: 128, 128>}, {pipeline_mode = #tpu.pipeline_mode<synchronous>, transform_indices = @transform_4, window_bounds = array<i64: 1, 128>}, {pipeline_mode = #tpu.pipeline_mode<synchronous>, transform_indices = @transform_5, window_bounds = array<i64: 128, 128>}, {pipeline_mode = #tpu.pipeline_mode<synchronous>, transform_indices = @transform_6, window_bounds = array<i64: 1, 128>}, {pipeline_mode = #tpu.pipeline_mode<synchronous>, transform_indices = @transform_7, window_bounds = array<i64: 128, 128>}, {pipeline_mode = #tpu.pipeline_mode<synchronous>, transform_indices = @transform_8, window_bounds = array<i64: 1, 128>}, {pipeline_mode = #tpu.pipeline_mode<synchronous>, transform_indices = @transform_9, window_bounds = array<i64: 128, 128>}, {pipeline_mode = #tpu.pipeline_mode<synchronous>, transform_indices = @transform_10, window_bounds = array<i64: 1, 128>}, {transform_indices = @transform_11, window_bounds = array<i64: 16, 128>}, {transform_indices = @transform_12, window_bounds = array<i64: 16, 128>}]} {
    %c0 = arith.constant 0 : index
    %c0_0 = arith.constant 0 : index
    %0 = vector.load %arg1[%c0, %c0_0] : memref<16x256xbf16, #tpu.memory_space<vmem>>, vector<16x256xbf16>
    %c0_1 = arith.constant 0 : index
    %c0_2 = arith.constant 0 : index
    %1 = vector.load %arg2[%c0_1, %c0_2] : memref<256x128xbf16, #tpu.memory_space<vmem>>, vector<256x128xbf16>
    %cst = arith.constant dense<0.000000e+00> : vector<16x128xf32>
    %2 = tpu.matmul %0, %1, %cst {dimension_numbers = #tpu.dot_dimension_numbers<[1], [0], [0], [1], [0, 0, 1, 1], [], []>} : vector<16x256xbf16>, vector<256x128xbf16>, vector<16x128xf32> -> vector<16x128xf32>
    %c0_3 = arith.constant 0 : index
    %c0_4 = arith.constant 0 : index
    %3 = vector.load %arg3[%c0_3, %c0_4] : memref<1x128xf32, #tpu.memory_space<vmem>>, vector<1x128xf32>
    %4 = vector.broadcast %3 : vector<1x128xf32> to vector<16x128xf32>
    %5 = arith.addf %2, %4 : vector<16x128xf32>
    %cst_5 = arith.constant 0.000000e+00 : f32
    %6 = vector.broadcast %cst_5 : f32 to vector<16x128xf32>
    %7 = arith.maximumf %5, %6 : vector<16x128xf32>
    %8 = arith.truncf %7 : vector<16x128xf32> to vector<16x128xbf16>
    %c0_6 = arith.constant 0 : index
    %c0_7 = arith.constant 0 : index
    %9 = vector.load %arg4[%c0_6, %c0_7] : memref<128x128xbf16, #tpu.memory_space<vmem>>, vector<128x128xbf16>
    %cst_8 = arith.constant dense<0.000000e+00> : vector<16x128xf32>
    %10 = tpu.matmul %8, %9, %cst_8 {dimension_numbers = #tpu.dot_dimension_numbers<[1], [0], [0], [1], [0, 0, 1, 1], [], []>} : vector<16x128xbf16>, vector<128x128xbf16>, vector<16x128xf32> -> vector<16x128xf32>
    %c0_9 = arith.constant 0 : index
    %c0_10 = arith.constant 0 : index
    %11 = vector.load %arg5[%c0_9, %c0_10] : memref<1x128xf32, #tpu.memory_space<vmem>>, vector<1x128xf32>
    %12 = vector.broadcast %11 : vector<1x128xf32> to vector<16x128xf32>
    %13 = arith.addf %10, %12 : vector<16x128xf32>
    %c0_11 = arith.constant 0 : index
    %c0_12 = arith.constant 0 : index
    %14 = vector.load %arg13[%c0_11, %c0_12] : memref<16x128xf32, #tpu.memory_space<vmem>>, vector<16x128xf32>
    tpu.vector_store %arg13[%c0_11, %c0_12], %13 {strides = array<i32>} : memref<16x128xf32, #tpu.memory_space<vmem>>, vector<16x128xf32>,
    %15 = arith.truncf %13 : vector<16x128xf32> to vector<16x128xbf16>
    %c0_13 = arith.constant 0 : index
    %c0_14 = arith.constant 0 : index
    %16 = vector.load %arg6[%c0_13, %c0_14] : memref<128x128xbf16, #tpu.memory_space<vmem>>, vector<128x128xbf16>
    %cst_15 = arith.constant dense<0.000000e+00> : vector<16x128xf32>
    %17 = tpu.matmul %15, %16, %cst_15 {dimension_numbers = #tpu.dot_dimension_numbers<[1], [0], [0], [1], [0, 0, 1, 1], [], []>} : vector<16x128xbf16>, vector<128x128xbf16>, vector<16x128xf32> -> vector<16x128xf32>
    %c0_16 = arith.constant 0 : index
    %c0_17 = arith.constant 0 : index
    %18 = vector.load %arg7[%c0_16, %c0_17] : memref<1x128xf32, #tpu.memory_space<vmem>>, vector<1x128xf32>
    %19 = vector.broadcast %18 : vector<1x128xf32> to vector<16x128xf32>
    %20 = arith.addf %17, %19 : vector<16x128xf32>
    %cst_18 = arith.constant 0.000000e+00 : f32
    %21 = vector.broadcast %cst_18 : f32 to vector<16x128xf32>
    %22 = arith.maximumf %20, %21 : vector<16x128xf32>
    %23 = arith.truncf %22 : vector<16x128xf32> to vector<16x128xbf16>
    %c0_19 = arith.constant 0 : index
    %c0_20 = arith.constant 0 : index
    %24 = vector.load %arg8[%c0_19, %c0_20] : memref<128x128xbf16, #tpu.memory_space<vmem>>, vector<128x128xbf16>
    %cst_21 = arith.constant dense<0.000000e+00> : vector<16x128xf32>
    %25 = tpu.matmul %23, %24, %cst_21 {dimension_numbers = #tpu.dot_dimension_numbers<[1], [0], [0], [1], [0, 0, 1, 1], [], []>} : vector<16x128xbf16>, vector<128x128xbf16>, vector<16x128xf32> -> vector<16x128xf32>
    %c0_22 = arith.constant 0 : index
    %c0_23 = arith.constant 0 : index
    %26 = vector.load %arg9[%c0_22, %c0_23] : memref<1x128xf32, #tpu.memory_space<vmem>>, vector<1x128xf32>
    %27 = vector.broadcast %26 : vector<1x128xf32> to vector<16x128xf32>
    %28 = arith.addf %25, %27 : vector<16x128xf32>
    %cst_24 = arith.constant 0.000000e+00 : f32
    %29 = vector.broadcast %cst_24 : f32 to vector<16x128xf32>
    %30 = arith.maximumf %28, %29 : vector<16x128xf32>
    %31 = arith.truncf %30 : vector<16x128xf32> to vector<16x128xbf16>
    %c0_25 = arith.constant 0 : index
    %c0_26 = arith.constant 0 : index
    %32 = vector.load %arg10[%c0_25, %c0_26] : memref<128x128xbf16, #tpu.memory_space<vmem>>, vector<128x128xbf16>
    %cst_27 = arith.constant dense<0.000000e+00> : vector<16x128xf32>
    %33 = tpu.matmul %31, %32, %cst_27 {dimension_numbers = #tpu.dot_dimension_numbers<[1], [0], [0], [1], [0, 0, 1, 1], [], []>} : vector<16x128xbf16>, vector<128x128xbf16>, vector<16x128xf32> -> vector<16x128xf32>
    %c0_28 = arith.constant 0 : index
    %c0_29 = arith.constant 0 : index
    %34 = vector.load %arg11[%c0_28, %c0_29] : memref<1x128xf32, #tpu.memory_space<vmem>>, vector<1x128xf32>
    %35 = vector.broadcast %34 : vector<1x128xf32> to vector<16x128xf32>
    %36 = arith.addf %33, %35 : vector<16x128xf32>
    %cst_30 = arith.constant dense<0xFF800000> : vector<16xf32>
    %37 = vector.multi_reduction <maximumf>, %36, %cst_30 [1] : vector<16x128xf32> to vector<16xf32>
    %38 = vector.shape_cast %37 : vector<16xf32> to vector<16x1xf32>
    %39 = vector.broadcast %38 : vector<16x1xf32> to vector<16x128xf32>
    %40 = arith.subf %36, %39 : vector<16x128xf32>
    %41 = math.exp %40 : vector<16x128xf32>
    %cst_31 = arith.constant dense<0.000000e+00> : vector<16xf32>
    %42 = vector.multi_reduction <add>, %41, %cst_31 [1] : vector<16x128xf32> to vector<16xf32>
    %43 = vector.shape_cast %42 : vector<16xf32> to vector<16x1xf32>
    %44 = vector.broadcast %43 : vector<16x1xf32> to vector<16x128xf32>
    %45 = arith.divf %41, %44 : vector<16x128xf32>
    %c0_32 = arith.constant 0 : index
    %c0_33 = arith.constant 0 : index
    %46 = vector.load %arg12[%c0_32, %c0_33] : memref<16x128xf32, #tpu.memory_space<vmem>>, vector<16x128xf32>
    tpu.vector_store %arg12[%c0_32, %c0_33], %45 {strides = array<i32>} : memref<16x128xf32, #tpu.memory_space<vmem>>, vector<16x128xf32>,
    return
  }
  func.func @transform_0(%arg0: i32) -> (i32, i32) {
    %c0_i32 = arith.constant 0 : i32
    %c0_i32_0 = arith.constant 0 : i32
    return %arg0, %c0_i32 : i32, i32
  }
  func.func @transform_1(%arg0: i32) -> (i32, i32) {
    %c0_i32 = arith.constant 0 : i32
    %c0_i32_0 = arith.constant 0 : i32
    %c0_i32_1 = arith.constant 0 : i32
    return %c0_i32, %c0_i32_0 : i32, i32
  }
  func.func @transform_2(%arg0: i32) -> (i32, i32) {
    %c0_i32 = arith.constant 0 : i32
    %c0_i32_0 = arith.constant 0 : i32
    %c0_i32_1 = arith.constant 0 : i32
    return %c0_i32, %c0_i32_0 : i32, i32
  }
  func.func @transform_3(%arg0: i32) -> (i32, i32) {
    %c0_i32 = arith.constant 0 : i32
    %c0_i32_0 = arith.constant 0 : i32
    %c0_i32_1 = arith.constant 0 : i32
    return %c0_i32, %c0_i32_0 : i32, i32
  }
  func.func @transform_4(%arg0: i32) -> (i32, i32) {
    %c0_i32 = arith.constant 0 : i32
    %c0_i32_0 = arith.constant 0 : i32
    %c0_i32_1 = arith.constant 0 : i32
    return %c0_i32, %c0_i32_0 : i32, i32
  }
  func.func @transform_5(%arg0: i32) -> (i32, i32) {
    %c0_i32 = arith.constant 0 : i32
    %c0_i32_0 = arith.constant 0 : i32
    %c0_i32_1 = arith.constant 0 : i32
    return %c0_i32, %c0_i32_0 : i32, i32
  }
  func.func @transform_6(%arg0: i32) -> (i32, i32) {
    %c0_i32 = arith.constant 0 : i32
    %c0_i32_0 = arith.constant 0 : i32
    %c0_i32_1 = arith.constant 0 : i32
    return %c0_i32, %c0_i32_0 : i32, i32
  }
  func.func @transform_7(%arg0: i32) -> (i32, i32) {
    %c0_i32 = arith.constant 0 : i32
    %c0_i32_0 = arith.constant 0 : i32
    %c0_i32_1 = arith.constant 0 : i32
    return %c0_i32, %c0_i32_0 : i32, i32
  }
  func.func @transform_8(%arg0: i32) -> (i32, i32) {
    %c0_i32 = arith.constant 0 : i32
    %c0_i32_0 = arith.constant 0 : i32
    %c0_i32_1 = arith.constant 0 : i32
    return %c0_i32, %c0_i32_0 : i32, i32
  }
  func.func @transform_9(%arg0: i32) -> (i32, i32) {
    %c0_i32 = arith.constant 0 : i32
    %c0_i32_0 = arith.constant 0 : i32
    %c0_i32_1 = arith.constant 0 : i32
    return %c0_i32, %c0_i32_0 : i32, i32
  }
  func.func @transform_10(%arg0: i32) -> (i32, i32) {
    %c0_i32 = arith.constant 0 : i32
    %c0_i32_0 = arith.constant 0 : i32
    %c0_i32_1 = arith.constant 0 : i32
    return %c0_i32, %c0_i32_0 : i32, i32
  }
  func.func @transform_11(%arg0: i32) -> (i32, i32) {
    %c0_i32 = arith.constant 0 : i32
    %c0_i32_0 = arith.constant 0 : i32
    return %arg0, %c0_i32 : i32, i32
  }
  func.func @transform_12(%arg0: i32) -> (i32, i32) {
    %c0_i32 = arith.constant 0 : i32
    %c0_i32_0 = arith.constant 0 : i32
    return %arg0, %c0_i32 : i32, i32
  }
}

</mosaic_0001>

<bundles_post_ra>
// kernel: vae_forward.1
= control target key start
LH: loop header
LB: loop body
LE: loop exit
PB: predicated region body
PF: predicated region fallthrough
CT: control target
= control target key end

     0   :  { %18 = vsyncpa [#allocation3], 0  ;;  %s1213_s0 = inlined_call_operand.vmem [shape: bf16[16,256], index: 0, kind: input, shape index: {}]   ;;  %s1214_s1 = inlined_call_operand.vmem [shape: bf16[256,128], index: 1, kind: input, shape index: {}]   ;;  %s1215_s2 = inlined_call_operand.vmem [shape: f32[1,128], index: 2, kind: input, shape index: {}]   ;;  %s1216_s3 = inlined_call_operand.hbm [shape: bf16[128,128], index: 3, kind: input, shape index: {}]   ;;  %s1217_s4 = inlined_call_operand.vmem [shape: f32[1,128], index: 4, kind: input, shape index: {}]   ;;  %s1218_s5 = inlined_call_operand.hbm [shape: bf16[128,128], index: 5, kind: input, shape index: {}]   ;;  %s1219_s6 = inlined_call_operand.vmem [shape: f32[1,128], index: 6, kind: input, shape index: {}]   ;;  %s1220_s7 = inlined_call_operand.hbm [shape: bf16[128,128], index: 7, kind: input, shape index: {}]   ;;  %s1221_s8 = inlined_call_operand.vmem [shape: f32[1,128], index: 8, kind: input, shape index: {}]   ;;  %s1222_s9 = inlined_call_operand.hbm [shape: bf16[128,128], index: 9, kind: input, shape index: {}]   ;;  %s1223_s10 = inlined_call_operand.vmem [shape: f32[1,128], index: 10, kind: input, shape index: {}]   ;;  %s1224_s11 = inlined_call_operand.vmem [shape: f32[16,128], index: 11, kind: output, shape index: {0}]   ;;  %s1225_s12 = inlined_call_operand.vmem [shape: f32[16,128], index: 12, kind: output, shape index: {1}]  }
   0x1   :  { %19 = vsyncpa [#allocation5], 0 }
   0x2   :  { %20 = vsyncpa [#allocation8], 0  ;;  %s46_s23 = sshll.u32 %s1218_s5, 4  ;;  %s1043_s24 = smov [#allocation4]   ;;  %s47_s23 = int_to_ptr.hbm [resolvable:$true] %s46_s23 }
   0x3   :  { %s48_s25 = sshll.u32 %s1043_s24, 4  ;;  %s31_s28 = sshll.u32 %s1216_s3, 4  ;;  %s49_s25 = int_to_ptr.vmem [resolvable:$true] %s48_s25  ;;  %s32_s28 = int_to_ptr.hbm [resolvable:$true] %s31_s28 }
   0x4   :  { %s1044_s29 = smov 64   ;;  %s1045_s30 = smov 4  }
   0x5   :  { %54 = dma.hbm_to_vmem [thread:$0]  %s47_s23, 1024, %s49_s25, [#allocation5], %s1044_s29, %s1044_s29, %s1045_s30  }
   0x6   :  { %s1046_s13 = smov [#allocation2]   ;;  %s61_s17 = sshll.u32 %s1220_s7, 4  ;;  %s62_s17 = int_to_ptr.hbm [resolvable:$true] %s61_s17 }
   0x7   :  { %s33_s14 = sshll.u32 %s1046_s13, 4  ;;  %s76_s19 = sshll.u32 %s1222_s9, 4  ;;  %s34_s14 = int_to_ptr.vmem [resolvable:$true] %s33_s14  ;;  %s77_s19 = int_to_ptr.hbm [resolvable:$true] %s76_s19 }
   0x8   :  { %39 = dma.hbm_to_vmem [thread:$0]  %s32_s28, 1024, %s34_s14, [#allocation3], %s1044_s29, %s1044_s29, %s1045_s30  }
   0x9   :  { %s1047_s20 = smov [#allocation6]   ;;  %s1048_s3 = smov [#allocation7]  }
   0xa   :  { %s63_s21 = sshll.u32 %s1047_s20, 4  ;;  %s78_s22 = sshll.u32 %s1048_s3, 4  ;;  %s64_s21 = int_to_ptr.vmem [resolvable:$true] %s63_s21  ;;  %s79_s22 = int_to_ptr.vmem [resolvable:$true] %s78_s22 }
   0xb   :  { %69 = dma.hbm_to_vmem [thread:$0]  %s62_s17, 1024, %s64_s21, [#allocation5], %s1044_s29, %s1044_s29, %s1045_s30  }
   0xc   :  { %84 = dma.hbm_to_vmem [thread:$0]  %s77_s19, 1024, %s79_s22, [#allocation8], %s1044_s29, %s1044_s29, %s1045_s30  }
   0xd   :  { %1037 = dma.done.wait [#allocation3], 1024  }
   0xe   :  { %1038 = vsyncadd [#allocation3], 4294966272 }
   0xf   :  { %1039 = dma.done.wait [#allocation5], 2048  }
  0x10   :  { %1040 = vsyncadd [#allocation5], 4294965248 }
  0x11   :  { %1041 = dma.done.wait [#allocation8], 1024  }
  0x12   :  { %1042 = vsyncadd [#allocation8], 4294966272  ;;  %v881_v0 = vld [vmem:[%s1214_s1 + $0x38] sm:$0xff]  ;;  %v880_v2 = vld [vmem:[%s1214_s1 + $0x30] sm:$0xff] }
  0x13   :  { %v889_v1 = vld [vmem:[%s1214_s1 + $0x78] sm:$0xff]  ;;  %247 = vmatpush.bf16.msra.mxu0 %v881_v0  ;;  %v888_v3 = vld [vmem:[%s1214_s1 + $0x70] sm:$0xff]  ;;  %v879_v4 = vld [vmem:[%s1214_s1 + $0x28] sm:$0xff] }
  0x14   :  { %261 = vmatpush.bf16.msra.mxu1 %v889_v1  ;;  %v887_v5 = vld [vmem:[%s1214_s1 + $0x68] sm:$0xff]  ;;  %v897_v6 = vld [vmem:[#allocation2 + $0x38] sm:$0xff]  ;;  %v896_v7 = vld [vmem:[#allocation2 + $0x30] sm:$0xff] }
  0x15   :  { %346 = vmatpush.bf16.msra.mxu2 %v897_v6  ;;  %v878_v8 = vld [vmem:[%s1214_s1 + $0x20] sm:$0xff]  ;;  %v895_v10 = vld [vmem:[#allocation2 + $0x28] sm:$0xff]  ;;  %v877_v11 = vld [vmem:[%s1214_s1 + $0x18] sm:$0xff] }
  0x16   :  { %v886_v9 = vld [vmem:[%s1214_s1 + $0x60] sm:$0xff]  ;;  %v885_v12 = vld [vmem:[%s1214_s1 + $0x58] sm:$0xff]  ;;  %v876_v14 = vld [vmem:[%s1214_s1 + $0x10] sm:$0xff] }
  0x17   :  { %248 = vmatpush.bf16.msra.mxu0 %v880_v2  ;;  %v894_v13 = vld [vmem:[#allocation2 + $0x20] sm:$0xff]  ;;  %v884_v15 = vld [vmem:[%s1214_s1 + $0x50] sm:$0xff]  ;;  %v875_v16 = vld [vmem:[%s1214_s1 + $0x8] sm:$0xff] }
  0x18   :  { %262 = vmatpush.bf16.msra.mxu1 %v888_v3  ;;  %v883_v17 = vld [vmem:[%s1214_s1 + $0x48] sm:$0xff]  ;;  %v874_v18 = vld [vmem:[%s1214_s1] sm:$0xff]  ;;  %v893_v26 = vld [vmem:[#allocation2 + $0x18] sm:$0xff] }
  0x19   :  { %347 = vmatpush.bf16.msra.mxu2 %v896_v7  ;;  %v882_v19 = vld [vmem:[%s1214_s1 + $0x40] sm:$0xff]  ;;  %v873_v21 = vld [vmem:[%s1213_s0 + $0x4] sm:$0xf0]  ;;  %v676_v23 = vld [vmem:[%s1213_s0 + $0x8] sm:$0xf0] }
  0x1a   :  { %v674_v20 = vld [vmem:[%s1213_s0] sm:$0xf]  ;;  %v872_v22 = vld [vmem:[%s1213_s0 + $0x4] sm:$0xf]  ;;  %v892_v27 = vld [vmem:[#allocation2 + $0x10] sm:$0xff] }
  0x1b   :  { %249 = vmatpush.bf16.msra.mxu0 %v879_v4  ;;  %v675_v24 = vor.u32 %v873_v21, %v674_v20  ;;  %v679_v25 = vor.u32 %v872_v22, %v676_v23  ;;  %v891_v28 = vld [vmem:[#allocation2 + $0x8] sm:$0xff]  ;;  %v890_v29 = vld [vmem:[#allocation2] sm:$0xff]  ;;  %v905_v30 = vld [vmem:[#allocation4 + $0x38] sm:$0xff] }
  0x1c   :  { %263 = vmatpush.bf16.msra.mxu1 %v887_v5  ;;  %431 = vmatpush.bf16.msra.mxu3 %v905_v30  ;;  %v904_v31 = vld [vmem:[#allocation4 + $0x30] sm:$0xff]  ;;  %v903_v32 = vld [vmem:[#allocation4 + $0x28] sm:$0xff]  ;;  %v902_v33 = vld [vmem:[#allocation4 + $0x20] sm:$0xff] }
  0x1d   :  { %348 = vmatpush.bf16.msra.mxu2 %v895_v10  ;;  %v901_v34 = vld [vmem:[#allocation4 + $0x18] sm:$0xff]  ;;  %v928_v37 = vld [vmem:[%s1215_s2] ss:$0 sm:$0xff]  ;;  %v900_v47 = vld [vmem:[#allocation4 + $0x10] sm:$0xff] }
  0x1e   :  { %v899_v48 = vld [vmem:[#allocation4 + $0x8] sm:$0xff]  ;;  %v898_v49 = vld [vmem:[#allocation4] sm:$0xff]  ;;  %v913_v50 = vld [vmem:[#allocation6 + $0x38] sm:$0xff] }
  0x1f   :  { %250 = vmatpush.bf16.msra.mxu0 %v878_v8  ;;  %v912_v51 = vld [vmem:[#allocation6 + $0x30] sm:$0xff]  ;;  %v911_v52 = vld [vmem:[#allocation6 + $0x28] sm:$0xff]  ;;  %v910_v53 = vld [vmem:[#allocation6 + $0x20] sm:$0xff] }
  0x20   :  { %264 = vmatpush.bf16.msra.mxu1 %v886_v9  ;;  %432 = vmatpush.bf16.msra.mxu3 %v904_v31  ;;  %v929_v54 = vld [vmem:[%s1217_s4] ss:$0 sm:$0xff]  ;;  %v909_v60 = vld [vmem:[#allocation6 + $0x18] sm:$0xff]  ;;  %v908_v61 = vld [vmem:[#allocation6 + $0x10] sm:$0xff] }
  0x21   :  { %349 = vmatpush.bf16.msra.mxu2 %v894_v13  ;;  %v907_v62 = vld [vmem:[#allocation6 + $0x8] sm:$0xff]  ;;  %v906_v63 = vld [vmem:[#allocation6] sm:$0xff]  ;;  %v921_v0 = vld [vmem:[#allocation7 + $0x38] sm:$0xff] }
  0x22   :  { %v920_v1 = vld [vmem:[#allocation7 + $0x30] sm:$0xff]  ;;  %v919_v2 = vld [vmem:[#allocation7 + $0x28] sm:$0xff]  ;;  %v918_v3 = vld [vmem:[#allocation7 + $0x20] sm:$0xff] }
  0x23   :  { %251 = vmatpush.bf16.msra.mxu0 %v877_v11  ;;  %v930_v5 = vld [vmem:[%s1219_s6] ss:$0 sm:$0xff]  ;;  %v916_v13 = vld [vmem:[#allocation7 + $0x10] sm:$0xff] }
  0x24   :  { %265 = vmatpush.bf16.msra.mxu1 %v885_v12  ;;  %433 = vmatpush.bf16.msra.mxu3 %v903_v32  ;;  %v917_v12 = vld [vmem:[#allocation7 + $0x18] sm:$0xff] }
  0x25   :  { %350 = vmatpush.bf16.msra.mxu2 %v893_v26 }
  0x27   :  { %252 = vmatpush.bf16.msra.mxu0 %v876_v14  ;;  %v915_v14 = vld [vmem:[#allocation7 + $0x8] sm:$0xff] }
  0x28   :  { %266 = vmatpush.bf16.msra.mxu1 %v884_v15  ;;  %434 = vmatpush.bf16.msra.mxu3 %v902_v33  ;;  %v914_v15 = vld [vmem:[#allocation7] sm:$0xff] }
  0x29   :  { %351 = vmatpush.bf16.msra.mxu2 %v892_v27 }
  0x2b   :  { %253 = vmatpush.bf16.msra.mxu0 %v875_v16 }
  0x2c   :  { %267 = vmatpush.bf16.msra.mxu1 %v883_v17  ;;  %435 = vmatpush.bf16.msra.mxu3 %v901_v34  ;;  %v931_v17 = vld [vmem:[%s1221_s8] ss:$0 sm:$0xff] }
  0x2d   :  { %352 = vmatpush.bf16.msra.mxu2 %v891_v28 }
  0x2f   :  { %254 = vmatpush.bf16.msra.mxu0 %v874_v18 }
  0x30   :  { %268 = vmatpush.bf16.msra.mxu1 %v882_v19  ;;  %436 = vmatpush.bf16.msra.mxu3 %v900_v47 }
  0x31   :  { %353 = vmatpush.bf16.msra.mxu2 %v890_v29 }
  0x32   :  { %255 = vmatmul.bf16.vlgmr.msra.gmra.mxu0 %v675_v24  ;;  %v932_v24 = vld [vmem:[%s1223_s10] ss:$0 sm:$0xff] }
  0x33   :  { %269 = vmatmul.bf16.vlgmr.msra.gmra.mxu1 %v679_v25  ;;  %516 = vmatpush.bf16.msrb.mxu0 %v913_v50 }
  0x34   :  { %437 = vmatpush.bf16.msra.mxu3 %v899_v48  ;;  %601 = vmatpush.bf16.msrb.mxu1 %v921_v0 }
  0x37   :  { %517 = vmatpush.bf16.msrb.mxu0 %v912_v51 }
  0x38   :  { %438 = vmatpush.bf16.msra.mxu3 %v898_v49  ;;  %602 = vmatpush.bf16.msrb.mxu1 %v920_v1 }
  0x3b   :  { %518 = vmatpush.bf16.msrb.mxu0 %v911_v52 }
  0x3c   :  { %603 = vmatpush.bf16.msrb.mxu1 %v919_v2 }
  0x3f   :  { %519 = vmatpush.bf16.msrb.mxu0 %v910_v53 }
  0x40   :  { %604 = vmatpush.bf16.msrb.mxu1 %v918_v3 }
  0x43   :  { %520 = vmatpush.bf16.msrb.mxu0 %v909_v60 }
  0x44   :  { %605 = vmatpush.bf16.msrb.mxu1 %v917_v12 }
  0x47   :  { %521 = vmatpush.bf16.msrb.mxu0 %v908_v61 }
  0x48   :  { %606 = vmatpush.bf16.msrb.mxu1 %v916_v13 }
  0x4b   :  { %522 = vmatpush.bf16.msrb.mxu0 %v907_v62 }
  0x4c   :  { %607 = vmatpush.bf16.msrb.mxu1 %v915_v14 }
  0x4f   :  { %523 = vmatpush.bf16.msrb.mxu0 %v906_v63 }
  0x50   :  { %608 = vmatpush.bf16.msrb.mxu1 %v914_v15 }
  0xaf   :  { %v256_v35 = vpop.f32.mrf.mxu0 }
  0xb0   :  { %v270_v36 = vpop.f32.mrf.mxu1  ;;  %v257_v38 = vadd.f32 %v928_v37, %v256_v35 }
  0xb2   :  { %v271_v40 = vadd.f32 %v270_v36, %v257_v38 }
  0xb4   :  { %v275_v44 = vmax.f32 %v271_v40, 0.0 }
  0xb7   :  { %v258_v39 = vpop.f32.mrf.mxu0 }
  0xb8   :  { %v259_v41 = vadd.f32 %v928_v37, %v258_v39  ;;  %v272_v42 = vpop.f32.mrf.mxu1 }
  0xba   :  { %v273_v43 = vadd.f32 %v272_v42, %v259_v41 }
  0xbc   :  { %v276_v45 = vmax.f32 %v273_v43, 0.0 }
  0xbe   :  { %v277_v46 = vpack.c.bf16 %v276_v45, %v275_v44 }
  0xc0   :  { %354 = vmatmul.bf16.vlgmr.msra.gmra.mxu2 %v277_v46 }
 0x143   :  { %v355_v55 = vpop.f32.mrf.mxu2 }
 0x144   :  { %v356_v56 = vadd.f32 %v929_v54, %v355_v55 }
 0x146   :  { %360 = vst [vmem:[%s1225_s12] sm:$0xff] %v356_v56 }
 0x14b   :  { %v357_v57 = vpop.f32.mrf.mxu2 }
 0x14c   :  { %v358_v58 = vadd.f32 %v929_v54, %v357_v57 }
 0x14e   :  { %361 = vst [vmem:[%s1225_s12 + $0x8] sm:$0xff] %v358_v58  ;;  %v362_v59 = vpack.c.bf16 %v358_v58, %v356_v56 }
 0x150   :  { %439 = vmatmul.bf16.vlgmr.msra.gmra.mxu3 %v362_v59 }
 0x1d3   :  { %v440_v4 = vpop.f32.mrf.mxu3 }
 0x1d4   :  { %v441_v6 = vadd.f32 %v930_v5, %v440_v4 }
 0x1d6   :  { %v445_v9 = vmax.f32 %v441_v6, 0.0 }
 0x1db   :  { %v442_v7 = vpop.f32.mrf.mxu3 }
 0x1dc   :  { %v443_v8 = vadd.f32 %v930_v5, %v442_v7 }
 0x1de   :  { %v446_v10 = vmax.f32 %v443_v8, 0.0 }
 0x1e0   :  { %v447_v11 = vpack.c.bf16 %v446_v10, %v445_v9 }
 0x1e2   :  { %524 = vmatmul.bf16.vlgmr.msrb.gmra.mxu0 %v447_v11 }
 0x25f   :  { %v525_v16 = vpop.f32.mrf.mxu0 }
 0x260   :  { %v526_v18 = vadd.f32 %v931_v17, %v525_v16 }
 0x262   :  { %v530_v21 = vmax.f32 %v526_v18, 0.0 }
 0x267   :  { %v527_v19 = vpop.f32.mrf.mxu0 }
 0x268   :  { %v528_v20 = vadd.f32 %v931_v17, %v527_v19 }
 0x26a   :  { %v531_v22 = vmax.f32 %v528_v20, 0.0 }
 0x26c   :  { %v532_v23 = vpack.c.bf16 %v531_v22, %v530_v21 }
 0x26e   :  { %609 = vmatmul.bf16.vlgmr.msrb.gmra.mxu1 %v532_v23 }
 0x2eb   :  { %v610_v25 = vpop.f32.mrf.mxu1 }
 0x2ec   :  { %v611_v26 = vadd.f32 %v932_v24, %v610_v25 }
 0x2ee   :  { %615 = vmax.xlane.f32.xlu0 %v611_v26 }
 0x2f3   :  { %v612_v27 = vpop.f32.mrf.mxu1 }
 0x2f4   :  { %v613_v28 = vadd.f32 %v932_v24, %v612_v27 }
 0x2f6   :  { %617 = vmax.xlane.f32.xlu0 %v613_v28 }
 0x361   :  { %v616_v29 = vpop.xlane.xlu0 %615 }
 0x362   :  { %v619_v30 = vsub.f32 %v611_v26, %v616_v29 }
 0x364   :  { %v621_v31 = vmul.f32 1.442695, %v619_v30 }
 0x366   :  { %933 = vpow2.f32 %v621_v31 }
 0x369   :  { %v618_v32 = vpop.xlane.xlu0 %617 }
 0x36a   :  { %v620_v33 = vsub.f32 %v613_v28, %v618_v32 }
 0x36c   :  { %v934_v34 = vpop.eup %933  ;;  %v623_v35 = vmul.f32 1.442695, %v620_v33 }
 0x36d   :  { %625 = vadd.xlane.f32.xlu1 %v934_v34 }
 0x36e   :  { %935 = vpow2.f32 %v623_v35 }
 0x374   :  { %v936_v36 = vpop.eup %935 }
 0x375   :  { %627 = vadd.xlane.f32.xlu1 %v936_v36 }
 0x3e0   :  { %v626_v37 = vpop.xlane.xlu1 %625 }
 0x3e1   :  { %937 = vrcp.f32 %v626_v37  ;;  %v640_v42 = vand.u32 2147483648, %v626_v37  ;;  %v638_v44 = vand.u32 2147483647, %v626_v37  ;;  %vm634_vm1 = vweird.f32 %v626_v37 }
 0x3e3   :  { %v641_v47 = vor.u32 1.1754944e-38, %v640_v42  ;;  %vm639_vm3 = vcmp.eq.f32.partialorder %v638_v44, 8.507059e+37 }
 0x3e7   :  { %v938_v38 = vpop.eup %937 }
 0x3e8   :  { %v630_v39 = vmul.f32 %v938_v38, %v626_v37  ;;  %v628_v40 = vpop.xlane.xlu1 %627  ;;  %vm635_vm0 = vweird.f32 %v938_v38 }
 0x3e9   :  { %939 = vrcp.f32 %v628_v40  ;;  %vm636_vm2 = vmor %vm634_vm1, %vm635_vm0  ;;  %v655_v53 = vand.u32 2147483648, %v628_v40  ;;  %v653_v55 = vand.u32 2147483647, %v628_v40  ;;  %vm649_vm5 = vweird.f32 %v628_v40 }
 0x3ea   :  { %v631_v41 = vsub.f32 1.0, %v630_v39 }
 0x3eb   :  { %v656_v57 = vor.u32 1.1754944e-38, %v655_v53  ;;  %vm654_vm7 = vcmp.eq.f32.partialorder %v653_v55, 8.507059e+37 }
 0x3ec   :  { %v632_v43 = vmul.f32 %v938_v38, %v631_v41 }
 0x3ee   :  { %v633_v45 = vadd.f32 %v938_v38, %v632_v43 }
 0x3ef   :  { %v940_v46 = vpop.eup %939 }
 0x3f0   :  { %v637_v48 = vsel %vm636_vm2, %v938_v38, %v633_v45  ;;  %v645_v49 = vmul.f32 %v940_v46, %v628_v40  ;;  %vm650_vm4 = vweird.f32 %v940_v46 }
 0x3f1   :  { %v642_v50 = vsel %vm639_vm3, %v641_v47, %v637_v48  ;;  %vm651_vm6 = vmor %vm649_vm5, %vm650_vm4 }
 0x3f2   :  { %v643_v51 = vmul.f32 %v934_v34, %v642_v50  ;;  %v646_v52 = vsub.f32 1.0, %v645_v49 }
 0x3f4   :  { %659 = vst [vmem:[%s1224_s11] sm:$0xff] %v643_v51  ;;  %v647_v54 = vmul.f32 %v940_v46, %v646_v52 }
 0x3f6   :  { %v648_v56 = vadd.f32 %v940_v46, %v647_v54 }
 0x3f8   :  { %v652_v58 = vsel %vm651_vm6, %v940_v46, %v648_v56 }
 0x3f9   :  { %v657_v59 = vsel %vm654_vm7, %v656_v57, %v652_v58 }
 0x3fa   :  { %v658_v60 = vmul.f32 %v936_v36, %v657_v59 }
 0x3fc   :  { %660 = vst [vmem:[%s1224_s11 + $0x8] sm:$0xff] %v658_v60 }
 0x3fd   :  { %669 = vsyncpa [#allocation3], 1 }
 0x3fe   :  { %670 = vsyncpa [#allocation5], 1 }
 0x3ff   :  { %671 = vsyncpa [#allocation8], 1 }

</bundles_post_ra>
